<compile_context>
chip_gen: v6e
topology: v6e:2x2x1
jax: 0.10.0
libtpu: 0.0.40
codegen_flags: <defaults>
</compile_context>

<pallas_src>
import functools

import jax
import jax.numpy as jnp
from jax.experimental import pallas as pl
from jax.experimental.pallas import tpu as pltpu


def _round_up(x, m):
    return (x + m - 1) // m * m


@functools.lru_cache(maxsize=1)
def _vmem_limit_bytes():
    """Generation-aware scoped-VMEM limit (review item: 48 MiB is a v7x constraint
    that should not be paid on 128-MiB v5e/v6e parts)."""
    try:
        cap = getattr(pltpu.get_tpu_info(), "vmem_capacity_bytes", None)
    except Exception:
        cap = None
    if not cap:
        return None                      # unknown part -> compiler default
    if cap >= 96 * 1024 * 1024:          # v5e / v6e class (128 MiB VMEM)
        return 100 * 1024 * 1024
    return min(48 * 1024 * 1024, int(cap * 3 // 4))   # v7x class (64 MiB VMEM)


def _pick_row_tile(h, wp, p_max=1024):
    """Largest divisor of h with th*wp <= p_max matmul rows; keep >= 2 tiles so the
    pipeline / megacore has work to overlap (review row-tile item)."""
    best = 1
    for cand in range(1, h + 1):
        if h % cand == 0 and cand * wp <= p_max:
            best = cand
    if best == h and h > 1:
        for cand in range(h - 1, 0, -1):
            if h % cand == 0:
                return cand
    return best


def _row_shift(x, j):
    """result[q] = x[q + j] (rows of a flattened (th*Wp, Cin) strip).  The wrapped
    tail only ever lands in width-padding columns, which are sliced off before the
    store, so plain rotation semantics are safe.
    TODO(synk): pltpu.roll(x, shift=x.shape[0]-j, axis=0) puts this on the XLU slot."""
    if j == 0:
        return x
    return jnp.concatenate([x[j:, :], x[:j, :]], axis=0)


# ----------------------------------------------------------------------------
# Fused direct-convolution kernel.
# Grid step = (batch element b, output-row tile t).  Per step it computes a
# (th, W, Cout) output strip: for each kernel row i it loads one contiguous
# row strip of the padded image from VMEM scratch, packs g kw-shifted copies
# along the matmul K axis, and accumulates (P, g*Cin) @ (g*Cin, Cout) in f32.
# Folded bias/BN affine, optional ReLU and optional residual add are fused.
# ----------------------------------------------------------------------------
def _conv_kernel(*refs, kh_size, kw_size, j_groups, pad_h, pad_w,
                 apply_scale, apply_relu, add_residual):
    it = iter(refs)
    x_ref = next(it)                                # (H, W, Cin)          bf16
    w_ref = next(it)                                # (KH*KW*Cin, Cmat)    bf16
    sh_ref = next(it)                               # (1, Cmat) f32 (bias [+BN] folded)
    sc_ref = next(it) if apply_scale else None      # (1, Cmat) f32
    res_ref = next(it) if add_residual else None    # (th, W, Cout)        bf16
    o_ref = next(it)                                # (th, W, Cout)
    pad_ref = next(it)                              # (Hp, Wp, Cin) bf16 scratch

    th, out_w, cout = o_ref.shape
    img_h, img_w, cin = x_ref.shape
    wp = pad_ref.shape[1]
    cmat = w_ref.shape[-1]
    p = th * wp
    t = pl.program_id(1)

    # Once per batch element: build the zero-padded image in VMEM (in-kernel
    # 'same' padding -- no padded activation copy in HBM).
    @pl.when(t == 0)
    def _():
        pad_ref[...] = jnp.zeros_like(pad_ref)
        pad_ref[pl.ds(pad_h, img_h), pl.ds(pad_w, img_w), :] = x_ref[...]

    row0 = pl.multiple_of(t * th, th)

    acc = jnp.zeros((p, cmat), jnp.float32)
    for i in range(kh_size):                        # static, unrolled
        # Rows-only slice (full padded width) -> contiguous, no strided copy.
        strip = pad_ref[pl.ds(row0 + i, th), :, :].reshape(p, cin)
        for (j0, j1) in j_groups:                   # kw taps packed along K
            pieces = [_row_shift(strip, j) for j in range(j0, j1)]
            packed = pieces[0] if len(pieces) == 1 else jnp.concatenate(pieces, axis=-1)
            k0 = (i * kw_size + j0) * cin
            wg = w_ref[pl.ds(k0, (j1 - j0) * cin), :]
            acc = acc + jnp.dot(packed, wg, preferred_element_type=jnp.float32)

    if apply_scale:
        acc = acc * sc_ref[...]
    acc = acc + sh_ref[...]
    if apply_relu:
        acc = jnp.maximum(acc, 0.0)

    # Drop the width-padding columns and any padded output channels before store.
    out = acc.reshape(th, wp, cmat)[:, :out_w, :cout]
    if add_residual:
        out = out + res_ref[...].astype(jnp.float32)
    o_ref[...] = out.astype(o_ref.dtype)


def conv2d_direct(x_nhwc, w, bias, bn_scale=None, bn_shift=None, *,
                  relu=True, residual=None, cout_pad=None,
                  out_dtype=jnp.bfloat16, p_max=1024):
    """'same' conv (stride 1, pad k//2) + bias (+ folded inference-mode BN affine)
    (+ ReLU) (+ residual add) as a single fused Pallas kernel.

    x_nhwc:   (N, H, W, Cin)
    w:        (KH, KW, Cin, Cout)
    bias:     (Cout,)
    bn_scale/bn_shift: optional (Cout,) folded BatchNorm affine
    residual: optional (N, H, W, Cout), added after the ReLU
    cout_pad: pad Cout for the matmul/accumulator only; stores keep the real Cout.
    """
    n, h, w_, cin = x_nhwc.shape
    kh, kw, wcin, cout = w.shape
    assert wcin == cin, (wcin, cin)
    ph, pw = kh // 2, kw // 2

    apply_scale = bn_scale is not None
    bias = bias.astype(jnp.float32)
    if apply_scale:
        scale = bn_scale.astype(jnp.float32)
        shift = bias * scale + bn_shift.astype(jnp.float32)   # fold bias into BN shift
    else:
        scale, shift = None, bias

    cmat = cout if cout_pad is None else max(cout, cout_pad)
    wmat = w.reshape(kh * kw * cin, cout).astype(jnp.bfloat16)
    if cmat != cout:
        wmat = jnp.pad(wmat, ((0, 0), (0, cmat - cout)))
        shift = jnp.pad(shift, (0, cmat - cout))
        if apply_scale:
            scale = jnp.pad(scale, (0, cmat - cout))

    hp = h + 2 * ph
    wp = _round_up(w_ + 2 * pw, 16)       # multiple of 16: layout-preserving bf16 reshapes
    th = _pick_row_tile(h, wp, p_max)
    grid = (n, h // th)

    # Taps packed per matmul so K = g*Cin ~ 256 (fills the 256-deep v6e/v7x MXU;
    # on v5e's 128-deep MXU a K=256 push simply runs as two internal passes).
    g = max(1, 256 // max(cin, 1))
    j_groups = tuple((j0, min(j0 + g, kw)) for j0 in range(0, kw, g))

    kernel = functools.partial(
        _conv_kernel, kh_size=kh, kw_size=kw, j_groups=j_groups,
        pad_h=ph, pad_w=pw, apply_scale=apply_scale, apply_relu=relu,
        add_residual=residual is not None)

    in_specs = [
        # Whole unpadded image for batch b, resident across its row tiles.
        pl.BlockSpec((pl.Squeezed(), h, w_, cin), lambda b, t: (b, 0, 0, 0)),
        pl.BlockSpec((kh * kw * cin, cmat), lambda b, t: (0, 0)),
        pl.BlockSpec((1, cmat), lambda b, t: (0, 0)),
    ]
    inputs = [x_nhwc.astype(jnp.bfloat16), wmat, shift.reshape(1, cmat)]
    if apply_scale:
        in_specs.append(pl.BlockSpec((1, cmat), lambda b, t: (0, 0)))
        inputs.append(scale.reshape(1, cmat))
    if residual is not None:
        assert residual.shape == (n, h, w_, cout), (residual.shape, (n, h, w_, cout))
        in_specs.append(pl.BlockSpec((pl.Squeezed(), th, w_, cout),
                                     lambda b, t: (b, t, 0, 0)))
        inputs.append(residual.astype(jnp.bfloat16))

    return pl.pallas_call(
        kernel,
        out_shape=jax.ShapeDtypeStruct((n, h, w_, cout), out_dtype),
        grid=grid,
        in_specs=in_specs,
        out_specs=pl.BlockSpec((pl.Squeezed(), th, w_, cout),
                               lambda b, t: (b, t, 0, 0)),
        scratch_shapes=[pltpu.VMEM((hp, wp, cin), jnp.bfloat16)],
        compiler_params=pltpu.CompilerParams(
            # t must stay "arbitrary": the padded-image scratch is filled at t==0.
            dimension_semantics=("parallel", "arbitrary"),
            vmem_limit_bytes=_vmem_limit_bytes()),
    )(*inputs)


def _im2col_patches(x, kh, kw):
    """Wrapper-side im2col for the (near-)1-channel first conv: the 81-channel
    patch tensor costs about one trunk activation in HBM and turns conv1 into a
    single dense MXU matmul (review item: replace the VPU outer-product path)."""
    n, h, w_, c = x.shape
    ph, pw = kh // 2, kw // 2
    xp = jnp.pad(x, ((0, 0), (ph, ph), (pw, pw), (0, 0)))
    cols = [xp[:, i:i + h, j:j + w_, :] for i in range(kh) for j in range(kw)]
    return jnp.concatenate(cols, axis=-1)            # (N, H, W, KH*KW*C)


def pixel_shuffle_nhwc(x, r):
    """PyTorch PixelShuffle semantics in NHWC: channel c*r*r + i*r + j goes to
    output pixel (h*r+i, w*r+j, c).  Pure permutation (layout plumbing)."""
    n, h, w, cr2 = x.shape
    c = cr2 // (r * r)
    x = x.reshape(n, h, w, c, r, r)
    x = jnp.transpose(x, (0, 1, 4, 2, 5, 3))          # (N, H, r, W, r, C)
    return x.reshape(n, h * r, w * r, c)


# ----------------------------------------------------------------------------
# Deterministic parameter construction (shapes from Generator.__init__)
# ----------------------------------------------------------------------------
def _conv_params(key, kh, kw, cin, cout):
    kw_key, kb_key = jax.random.split(key)
    fan_in = kh * kw * cin
    w = jax.random.normal(kw_key, (kh, kw, cin, cout), jnp.float32) / jnp.sqrt(fan_in)
    b = 0.1 * jax.random.normal(kb_key, (cout,), jnp.float32)
    return w, b


def _bn_params(key, c, eps=1e-5):
    k1, k2, k3, k4 = jax.random.split(key, 4)
    gamma = 1.0 + 0.1 * jax.random.normal(k1, (c,), jnp.float32)
    beta = 0.1 * jax.random.normal(k2, (c,), jnp.float32)
    mean = 0.1 * jax.random.normal(k3, (c,), jnp.float32)
    var = jnp.abs(jax.random.normal(k4, (c,), jnp.float32)) + 0.5
    scale = gamma / jnp.sqrt(var + eps)
    shift = beta - mean * scale
    return scale, shift


def make_generator_params(key, *, residual_depth, out_channels, in_channels=1,
                          magnification=2, num_magnifications=1,
                          latent_channel_count=64):
    state = {"key": key}

    def nk():
        state["key"], sub = jax.random.split(state["key"])
        return sub

    p = {}
    p["conv1_w"], p["conv1_b"] = _conv_params(nk(), 9, 9, in_channels,
                                              latent_channel_count)
    p["res_blocks"] = []
    for _ in range(residual_depth):
        blk = {}
        blk["w1"], blk["b1"] = _conv_params(nk(), 3, 3, latent_channel_count,
                                            latent_channel_count)
        blk["sc1"], blk["sh1"] = _bn_params(nk(), latent_channel_count)
        blk["w2"], blk["b2"] = _conv_params(nk(), 3, 3, latent_channel_count,
                                            latent_channel_count)
        blk["sc2"], blk["sh2"] = _bn_params(nk(), latent_channel_count)
        p["res_blocks"].append(blk)
    p["conv2_w"], p["conv2_b"] = _conv_params(nk(), 9, 9, latent_channel_count,
                                              latent_channel_count)
    p["bn_res_sc"], p["bn_res_sh"] = _bn_params(nk(), latent_channel_count)
    p["mag_blocks"] = []
    for _ in range(num_magnifications):
        mw, mb = _conv_params(nk(), 3, 3, latent_channel_count,
                              latent_channel_count * magnification * magnification)
        p["mag_blocks"].append({"w": mw, "b": mb})
    p["conv3_w"], p["conv3_b"] = _conv_params(nk(), 3, 3, latent_channel_count,
                                              out_channels)
    p["magnification"] = magnification
    p["latent"] = latent_channel_count
    p["out_channels"] = out_channels
    return p


# ----------------------------------------------------------------------------
# Generator forward pass (matches PyTorch module semantics; BatchNorm is applied
# in inference mode with running stats folded into a per-channel scale/shift).
# bf16 activations -> small drift vs a float32 PyTorch reference is expected.
# ----------------------------------------------------------------------------
def generator_forward(x_nchw, params):
    lat = params["latent"]
    x = jnp.transpose(x_nchw, (0, 2, 3, 1))                  # NCHW -> NHWC
    in_ch = x.shape[-1]

    # conv1 + ReLU (no BN)
    if in_ch * 81 <= 512:
        patches = _im2col_patches(x.astype(jnp.bfloat16), 9, 9)
        w1 = params["conv1_w"].reshape(1, 1, 81 * in_ch, lat)
        x = conv2d_direct(patches, w1, params["conv1_b"], relu=True)
    else:
        x = conv2d_direct(x, params["conv1_w"], params["conv1_b"], relu=True)
    res_0 = x

    # residual blocks: (Conv->BN->ReLU->Conv->BN->ReLU) + skip
    # TODO(synk): fuse each block's two convs + skip into one pallas_call.
    for blk in params["res_blocks"]:
        res = x
        x = conv2d_direct(x, blk["w1"], blk["b1"], blk["sc1"], blk["sh1"], relu=True)
        x = conv2d_direct(x, blk["w2"], blk["b2"], blk["sc2"], blk["sh2"],
                          relu=True, residual=res)

    # conv2 -> bn_res -> + res_0   (no ReLU here)
    x = conv2d_direct(x, params["conv2_w"], params["conv2_b"],
                      params["bn_res_sc"], params["bn_res_sh"],
                      relu=False, residual=res_0)

    # subpixel blocks: Conv -> PixelShuffle -> ReLU (ReLU fused into the conv,
    # it commutes with the permutation)
    r = params["magnification"]
    for mag in params["mag_blocks"]:
        x = conv2d_direct(x, mag["w"], mag["b"], relu=True)
        x = pixel_shuffle_nhwc(x, r)

    # conv3 + ReLU; matmul padded to 128 output lanes but only the real channel
    # is written back to HBM (f32).
    x = conv2d_direct(x, params["conv3_w"], params["conv3_b"], relu=True,
                      cout_pad=128, out_dtype=jnp.float32)

    return jnp.transpose(x, (0, 3, 1, 2))                    # NHWC -> NCHW


# ----------------------------------------------------------------------------
# Pure-JAX reference mirroring the kernel's numerics (bf16 inputs, f32 accum) for
# an in-script correctness check of the packing / shifting / padding index math.
# ----------------------------------------------------------------------------
def _reference_conv(x, w, bias, scale=None, shift=None, *, relu=True,
                    residual=None, out_dtype=jnp.bfloat16):
    xf = x.astype(jnp.bfloat16).astype(jnp.float32)
    wf = w.astype(jnp.bfloat16).astype(jnp.float32)
    kh, kw = w.shape[0], w.shape[1]
    y = jax.lax.conv_general_dilated(
        xf, wf, window_strides=(1, 1),
        padding=((kh // 2, kh // 2), (kw // 2, kw // 2)),
        dimension_numbers=("NHWC", "HWIO", "NHWC"),
        precision=jax.lax.Precision.HIGHEST,
        preferred_element_type=jnp.float32)
    if scale is not None:
        sc = scale.astype(jnp.float32)
        y = y * sc + (bias.astype(jnp.float32) * sc + shift.astype(jnp.float32))
    else:
        y = y + bias.astype(jnp.float32)
    if relu:
        y = jnp.maximum(y, 0.0)
    if residual is not None:
        y = y + residual.astype(jnp.bfloat16).astype(jnp.float32)
    return y.astype(out_dtype)


def _reference_forward(x_nchw, params):
    x = jnp.transpose(x_nchw, (0, 2, 3, 1))
    x = _reference_conv(x, params["conv1_w"], params["conv1_b"], relu=True)
    res_0 = x
    for blk in params["res_blocks"]:
        res = x
        x = _reference_conv(x, blk["w1"], blk["b1"], blk["sc1"], blk["sh1"], relu=True)
        x = _reference_conv(x, blk["w2"], blk["b2"], blk["sc2"], blk["sh2"],
                            relu=True, residual=res)
    x = _reference_conv(x, params["conv2_w"], params["conv2_b"],
                        params["bn_res_sc"], params["bn_res_sh"],
                        relu=False, residual=res_0)
    r = params["magnification"]
    for mag in params["mag_blocks"]:
        x = _reference_conv(x, mag["w"], mag["b"], relu=True)
        x = pixel_shuffle_nhwc(x, r)
    x = _reference_conv(x, params["conv3_w"], params["conv3_b"], relu=True,
                        out_dtype=jnp.float32)
    return jnp.transpose(x, (0, 3, 1, 2))


if __name__ == "__main__":
    key = jax.random.PRNGKey(0)
    k_x, k_p = jax.random.split(key)

    # Small shapes consistent with the module: batch=2, 1 input channel, 16x16.
    batch, in_channels, height, width = 2, 1, 16, 16
    residual_depth = 2
    out_channels = 1
    num_magnifications = 1
    magnification = 2

    x = jax.random.normal(k_x, (batch, in_channels, height, width), jnp.float32)
    params = make_generator_params(
        k_p, residual_depth=residual_depth, out_channels=out_channels,
        in_channels=in_channels, magnification=magnification,
        num_magnifications=num_magnifications, latent_channel_count=64)

    y = jax.block_until_ready(generator_forward(x, params))

    expected = (batch, out_channels,
                height * magnification ** num_magnifications,
                width * magnification ** num_magnifications)
    assert y.shape == expected, (y.shape, expected)
    assert bool(jnp.all(y >= 0.0))            # final ReLU
    assert bool(jnp.all(jnp.isfinite(y)))

    # Correctness check against a pure-JAX reference with matching bf16 numerics.
    y_ref = jax.block_until_ready(_reference_forward(x, params))
    rel = float(jnp.linalg.norm((y - y_ref).ravel()) /
                (jnp.linalg.norm(y_ref.ravel()) + 1e-6))
    assert rel < 2e-2, f"relative L2 error too large: {rel}"

    print("KERNEL_OK")
</pallas_src>

<mosaic_0001>
module attributes {stable_mosaic.version = 11 : i64} {
  func.func @_conv_kernel(%arg0: i32, %arg1: i32, %arg2: memref<1x16x16x81xbf16, #tpu.memory_space<vmem>>, %arg3: memref<81x64xbf16, #tpu.memory_space<vmem>>, %arg4: memref<1x64xf32, #tpu.memory_space<vmem>>, %arg5: memref<1x8x16x64xbf16, #tpu.memory_space<vmem>>, %arg6: memref<16x16x81xbf16, #tpu.memory_space<vmem>>) attributes {dimension_semantics = [#tpu.dimension_semantics<parallel>, #tpu.dimension_semantics<arbitrary>], iteration_bounds = array<i64: 2, 2>, scalar_prefetch = 0 : i64, scratch_operands = 1 : i64, tpu.core_type = #tpu.core_type<tc>, window_params = [{transform_indices = @transform_0, window_bounds = array<i64: 1, 16, 16, 81>}, {pipeline_mode = #tpu.pipeline_mode<synchronous>, transform_indices = @transform_1, window_bounds = array<i64: 81, 64>}, {pipeline_mode = #tpu.pipeline_mode<synchronous>, transform_indices = @transform_2, window_bounds = array<i64: 1, 64>}, {transform_indices = @transform_3, window_bounds = array<i64: 1, 8, 16, 64>}]} {
    %c0_i32 = arith.constant 0 : i32
    %0 = arith.cmpi eq, %arg1, %c0_i32 : i32
    %1 = arith.extui %0 : i1 to i32
    %c0_i32_0 = arith.constant 0 : i32
    %2 = arith.cmpi ne, %1, %c0_i32_0 : i32
    scf.if %2 {
      %cst_13 = arith.constant 0.000000e+00 : bf16
      %23 = vector.broadcast %cst_13 : bf16 to vector<16x16x81xbf16>
      %c0_14 = arith.constant 0 : index
      %c0_15 = arith.constant 0 : index
      %c0_16 = arith.constant 0 : index
      %24 = vector.load %arg6[%c0_14, %c0_15, %c0_16] : memref<16x16x81xbf16, #tpu.memory_space<vmem>>, vector<16x16x81xbf16>
      tpu.vector_store %arg6[%c0_14, %c0_15, %c0_16], %23 {strides = array<i32>} : memref<16x16x81xbf16, #tpu.memory_space<vmem>>, vector<16x16x81xbf16>,
      %c0_17 = arith.constant 0 : index
      %c0_18 = arith.constant 0 : index
      %c0_19 = arith.constant 0 : index
      %c0_20 = arith.constant 0 : index
      %25 = vector.load %arg2[%c0_17, %c0_18, %c0_19, %c0_20] : memref<1x16x16x81xbf16, #tpu.memory_space<vmem>>, vector<1x16x16x81xbf16>
      %26 = vector.shape_cast %25 : vector<1x16x16x81xbf16> to vector<16x16x81xbf16>
      %c0_21 = arith.constant 0 : index
      %c0_22 = arith.constant 0 : index
      %c0_23 = arith.constant 0 : index
      %27 = vector.load %arg6[%c0_21, %c0_22, %c0_23] : memref<16x16x81xbf16, #tpu.memory_space<vmem>>, vector<16x16x81xbf16>
      tpu.vector_store %arg6[%c0_21, %c0_22, %c0_23], %26 {strides = array<i32>} : memref<16x16x81xbf16, #tpu.memory_space<vmem>>, vector<16x16x81xbf16>,
    } else {
    }
    %c8_i32 = arith.constant 8 : i32
    %3 = arith.muli %arg1, %c8_i32 : i32
    %4 = tpu.assume_multiple %3, 8 : i32
    %cst = arith.constant 0.000000e+00 : f32
    %5 = vector.broadcast %cst : f32 to vector<128x64xf32>
    %c0_i32_1 = arith.constant 0 : i32
    %6 = arith.addi %4, %c0_i32_1 : i32
    %7 = arith.index_cast %6 : i32 to index
    %c0 = arith.constant 0 : index
    %c0_2 = arith.constant 0 : index
    %8 = vector.load %arg6[%7, %c0, %c0_2] : memref<16x16x81xbf16, #tpu.memory_space<vmem>>, vector<8x16x81xbf16>
    %9 = vector.shape_cast %8 : vector<8x16x81xbf16> to vector<128x81xbf16>
    %c0_3 = arith.constant 0 : index
    %c0_4 = arith.constant 0 : index
    %10 = vector.load %arg3[%c0_3, %c0_4] : memref<81x64xbf16, #tpu.memory_space<vmem>>, vector<81x64xbf16>
    %cst_5 = arith.constant dense<0.000000e+00> : vector<128x64xf32>
    %11 = tpu.matmul %9, %10, %cst_5 {dimension_numbers = #tpu.dot_dimension_numbers<[1], [0], [0], [1], [0, 0, 1, 1], [], []>} : vector<128x81xbf16>, vector<81x64xbf16>, vector<128x64xf32> -> vector<128x64xf32>
    %12 = arith.addf %5, %11 : vector<128x64xf32>
    %c0_6 = arith.constant 0 : index
    %c0_7 = arith.constant 0 : index
    %13 = vector.load %arg4[%c0_6, %c0_7] : memref<1x64xf32, #tpu.memory_space<vmem>>, vector<1x64xf32>
    %14 = vector.broadcast %13 : vector<1x64xf32> to vector<128x64xf32>
    %15 = arith.addf %12, %14 : vector<128x64xf32>
    %cst_8 = arith.constant 0.000000e+00 : f32
    %16 = vector.broadcast %cst_8 : f32 to vector<128x64xf32>
    %17 = arith.maximumf %15, %16 : vector<128x64xf32>
    %18 = vector.shape_cast %17 : vector<128x64xf32> to vector<8x16x64xf32>
    %19 = arith.truncf %18 : vector<8x16x64xf32> to vector<8x16x64xbf16>
    %c0_9 = arith.constant 0 : index
    %c0_10 = arith.constant 0 : index
    %c0_11 = arith.constant 0 : index
    %c0_12 = arith.constant 0 : index
    %20 = vector.load %arg5[%c0_9, %c0_10, %c0_11, %c0_12] : memref<1x8x16x64xbf16, #tpu.memory_space<vmem>>, vector<1x8x16x64xbf16>
    %21 = vector.shape_cast %20 : vector<1x8x16x64xbf16> to vector<8x16x64xbf16>
    %22 = vector.shape_cast %19 : vector<8x16x64xbf16> to vector<1x8x16x64xbf16>
    tpu.vector_store %arg5[%c0_9, %c0_10, %c0_11, %c0_12], %22 {strides = array<i32>} : memref<1x8x16x64xbf16, #tpu.memory_space<vmem>>, vector<1x8x16x64xbf16>,
    return
  }
  func.func @transform_0(%arg0: i32, %arg1: i32) -> (i32, i32, i32, i32) {
    %c0_i32 = arith.constant 0 : i32
    %c0_i32_0 = arith.constant 0 : i32
    %c0_i32_1 = arith.constant 0 : i32
    %c0_i32_2 = arith.constant 0 : i32
    return %arg0, %c0_i32, %c0_i32_0, %c0_i32_1 : i32, i32, i32, i32
  }
  func.func @transform_1(%arg0: i32, %arg1: i32) -> (i32, i32) {
    %c0_i32 = arith.constant 0 : i32
    %c0_i32_0 = arith.constant 0 : i32
    %c0_i32_1 = arith.constant 0 : i32
    return %c0_i32, %c0_i32_0 : i32, i32
  }
  func.func @transform_2(%arg0: i32, %arg1: i32) -> (i32, i32) {
    %c0_i32 = arith.constant 0 : i32
    %c0_i32_0 = arith.constant 0 : i32
    %c0_i32_1 = arith.constant 0 : i32
    return %c0_i32, %c0_i32_0 : i32, i32
  }
  func.func @transform_3(%arg0: i32, %arg1: i32) -> (i32, i32, i32, i32) {
    %c0_i32 = arith.constant 0 : i32
    %c0_i32_0 = arith.constant 0 : i32
    %c0_i32_1 = arith.constant 0 : i32
    return %arg0, %arg1, %c0_i32, %c0_i32_0 : i32, i32, i32, i32
  }
}

</mosaic_0001>

<bundles_post_ra>
// kernel: tpu_custom_call.1
= control target key start
LH: loop header
LB: loop body
LE: loop exit
PB: predicated region body
PF: predicated region fallthrough
CT: control target
= control target key end

     0   :  { %8 = vsyncpa [#allocation4], 0  ;;  %s1571_s0 = inlined_call_operand.hbm [shape: bf16[2,16,16,81], index: 0, kind: input, shape index: {}]   ;;  %s1572_s1 = inlined_call_operand.vmem [shape: bf16[81,64], index: 1, kind: input, shape index: {}]   ;;  %s1573_s2 = inlined_call_operand.vmem [shape: f32[1,64], index: 2, kind: input, shape index: {}]   ;;  %s1574_s3 = inlined_call_operand.hbm [shape: bf16[2,16,16,64], index: 3, kind: output, shape index: {}]  }
   0x1   :  { %10 = vsyncpa [#allocation4 + $0x1], 0 }
   0x2   :  { %11 = vsyncpa [#allocation5], 0 }
   0x3   :  { %13 = vsyncpa [#allocation5 + $0x1], 0  ;;  %s1182_s12 = smov 0   ;;  %s1184_s13 = smov 0  }
   0x4   :  { %s1186_s14 = smov 0   ;;  %s1188_s15 = smov 0  }
   0x5   :  { %s1190_s16 = smov 0   ;;  %s1192_s17 = smov 0  }
   0x6   :  { %s1194_s18 = smov 0   ;;  %s1196_s19 = smov 0  }
   0x7   :  { %s1198_s20 = smov 0   ;;  %s1200_s21 = smov 0  }
   0x8   :  { %s1202_s22 = smov 0  }
   0x9 LB: > { %1578 = sst [smem:[#allocation9_spill]] %s1148_s21  ;;  %s748_s23 = sadd.s32 4294967295, %s1152_s22   ;;  %s1152_s22 = sphi %s1202_s22, %s19_s22   ;;  %s1148_s21 = sphi %s1200_s21, %s1588_s21   ;;  %s1144_s20 = sphi %s1198_s20, %s1596_s20   ;;  %s1140_s19 = sphi %s1196_s19, %s1586_s19   ;;  %s1136_s18 = sphi %s1194_s18, %s1595_s18   ;;  %s1132_s17 = sphi %s1192_s17, %s1594_s17   ;;  %s1128_s16 = sphi %s1190_s16, %s1593_s16   ;;  %s1124_s15 = sphi %s1188_s15, %s1592_s15   ;;  %s1120_s14 = sphi %s1186_s14, %s1591_s14   ;;  %s1116_s13 = sphi %s1184_s13, %s1590_s13   ;;  %s1112_s12 = sphi %s1182_s12, %s1589_s12  }
   0xa   : > { %s749_s24 = sadd.s32 4294967294, %s1152_s22   ;;  %s28_s25 = sadd.s32 1, %s1144_s20 }
   0xb   : > { %s31_s26 = sadd.s32 1, %s1148_s21  ;;  %p29_p0 = scmp.ge.s32.totalorder %s28_s25, 2 }
   0xc   : > { %s38_s27 = sadd.s32 1, %s1132_s17  ;;  %p45_p1 = scmp.ne.s32.totalorder %s1132_s17, %s1128_s16 }
   0xd   : > { %p46_p2 = scmp.eq.s32.totalorder %s1152_s22, 0  ;;  %s1598_s25 = smov (%p29_p0, %s28_s25), 0 }
   0xe   : > { %1579 = sst [smem:[#allocation10_spill]] %s1598_s25  ;;  %s1600_s26 = smov (!%p29_p0, %s31_s26), %s1148_s21 }
   0xf   : > { %p1246_p3 = por %p46_p2, %p45_p1  ;;  %p51_p4 = scmp.ne.s32.totalorder %s1128_s16, %s1124_s15 }
  0x10   : > { %p33_p5 = scmp.ge.s32.totalorder %s1600_s26, 2  ;;  %p52_p6 = scmp.eq.s32.totalorder %s748_s23, 0 }
  0x11   : > { %s104_s29 = ssub.s32 %s1144_s20, %s1598_s25  ;;  %s108_s30 = sadd.s32 1, %s1120_s14 }
  0x12   : > { %s1602_s26 = smov (%p33_p5, %s1600_s26), 0  ;;  %p1256_p7 = por %p52_p6, %p51_p4 }
  0x13   : > { %1581 = sst [smem:[#allocation11_spill]] %s1602_s26  ;;  %p118_p8 = scmp.ne.s32.totalorder %s1120_s14, %s1116_s13 }
  0x14   : > { %s35_s5 = ssub.s32 %s1148_s21, %s1602_s26  ;;  %p119_p9 = scmp.eq.s32.totalorder %s748_s23, 3 }
  0x15   : > { %p36_p10 = scmp.eq.s32.totalorder %s35_s5, 0  ;;  %s105_s6 = sor.u32 %s104_s29, %s35_s5 }
  0x16   : > { %p106_p11 = scmp.eq.s32.totalorder %s105_s6, 0  ;;  %p1264_p12 = por %p119_p9, %p118_p8 }
  0x17   : > { %s1269_s8 = scalar_select %p36_p10, %s1132_s17, %s38_s27  }
  0x18   : > { %s1272_s9 = scalar_select %p106_p11, %s1120_s14, %s108_s30  }
  0x19   : > { %p124_p13 = scmp.ne.s32.totalorder %s1116_s13, %s1112_s12  ;;  %p125_p0 = scmp.eq.s32.totalorder %s749_s24, 3 }
  0x1a   : > { %p894_p1 = scmp.lt.s32.totalorder %s1152_s22, 4  ;;  %s151_s11 = sand.u32 1, %s1132_s17  }
  0x1b   : > { %p1277_p2 = por %p125_p0, %p124_p13  ;;  %s752_s15 = sshll.u32 %s151_s11, 7 }
  0x1c   : > { %s808_s23 = sshll.u32 %s1148_s21, 11  ;;  %s155_s26 = scalar_lea.vmem [#allocation3], %s752_s15 }
  0x1d   : > { %s161_s6 = scalar_lea.hbm %s1571_s0, %s808_s23  ;;  %s162_s25 = sshll.u32 %s155_s26, 4  ;;  %s163_s25 = int_to_ptr.vmem [resolvable:$true] %s162_s25 }
  0x1e   : > { %p1288_p4 = pnand %p894_p1, %p1246_p3  ;;  %p755_p5 = scmp.ge.s32.totalorder %s1152_s22, 1 }
  0x1f   : > { %s152_s24 = scalar_lea.sflag [#allocation4], %s151_s11  ;;  %s1017_s30 = scalar_lea.vmem %s163_s25, 2048 }
  0x20   : > { %p1006_p6 = pneg %p1288_p4  ;;  %p1018_p8 = scmp.ne.s32.totalorder %s163_s25, %s1017_s30 }
  0x21   : > { %s1154_s21 = smov [#allocation3]  }
  0x22   : > { %p1020_p9 = pnand %p1018_p8, %p1006_p6  ;;  %s1022_s29 = sshll.u32 %s1154_s21, 4  ;;  %s1023_s29 = int_to_ptr.vmem [resolvable:$false] %s1022_s29 }
  0x23   : > { %s1024_s15 = scalar_lea.vmem %s1023_s29, 4096  ;;  %p1025_p11 = scmp.lt.s32.totalorder %s163_s25, %s1023_s29 }
  0x24   : > { %p1021_p10 = pneg %p1020_p9  ;;  %p1026_p13 = scmp.lt.s32.totalorder %s1024_s15, %s1017_s30 }
  0x26   : > { %p1027_p0 = por %p1026_p13, %p1025_p11 }
  0x28   : > { %p1028_p3 = pnand %p1027_p0, %p1021_p10 }
  0x2a   : > { %1031 = shalt.err (!%p1028_p3)
}
  0x2b   : > { %s1155_s26 = smov 64   ;;  %s1156_s28 = smov 4  }
  0x2c   : > { %889 = dma.hbm_to_vmem [thread:$0]  (!%p1288_p4), %s161_s6, 2048, %s163_s25, %s152_s24, %s1155_s26, %s1155_s26, %s1156_s28  }
  0x2d   : > { %p170_p1 = scmp.lt.s32.totalorder %s1152_s22, 5 }
  0x2f   : > { %p171_p6 = pnand %p755_p5, %p170_p1 }
  0x30   : > { %s176_s21 = sand.u32 (!%p171_p6), 1, %s1128_s16  }
  0x31   : > { %174 = sbr.rel (%p171_p6) target bundleno = 350 (0x15e), region = 32  ;;  %s756_s11 = sshll.u32 (!%p171_p6), %s176_s21, 7 }
  0x32   : > { %s177_s23 = scalar_lea.sflag (!%p171_p6), [#allocation4], %s176_s21  ;;  %s1301_s5 = scalar_lea.vmem (!%p171_p6), [#allocation3], %s756_s11 }
  0x36   : > { %1103 = dma.done.wait (%p1256_p7), %s177_s23, 2048  }
  0x37   : > { %1105 = vsyncadd (%p1256_p7), %s177_s23, 4294965248  ;;  %s200_s27 = sand.u32 1, %s1116_s13   ;;  %p758_p4 = scmp.ne.s32.totalorder %s1136_s18, 0 }
  0x38   : > { %s757_s25 = sshll.u32 %s200_s27, 6 }
  0x39   : > { %s1310_s6 = scalar_lea.vmem [#allocation6], %s757_s25  ;;  %208 = sbr.rel (%p758_p4) target bundleno = 95 (0x5f), region = 40 }
  0x3e   : > { %vm209_vm0 = vcmask 658432   ;;  %v242_v0 = vld [vmem:[%s1301_s5] sm:$0xf]  ;;  %v243_v1 = vld [vmem:[%s1301_s5 + $0x4] sm:$0xf]  ;;  %v1157_v2 = vmov 0  }
  0x3f   : > { %210 = vst.msk [vmem:[#allocation2] sm:$0xf] %vm209_vm0, %v1157_v2  ;;  %211 = vst.msk [vmem:[#allocation2 + $0x4] sm:$0xf] %vm209_vm0, %v1157_v2  ;;  %v244_v3 = vld [vmem:[%s1301_s5 + $0x8] sm:$0xf] }
  0x40   : > { %212 = vst.msk [vmem:[#allocation2 + $0x8] sm:$0xf] %vm209_vm0, %v1157_v2  ;;  %213 = vst.msk [vmem:[#allocation2 + $0xc] sm:$0xf] %vm209_vm0, %v1157_v2  ;;  %v245_v4 = vld [vmem:[%s1301_s5 + $0xc] sm:$0xf] }
  0x41   : > { %214 = vst.msk [vmem:[#allocation2 + $0x10] sm:$0xf] %vm209_vm0, %v1157_v2  ;;  %215 = vst.msk [vmem:[#allocation2 + $0x14] sm:$0xf] %vm209_vm0, %v1157_v2  ;;  %v246_v5 = vld [vmem:[%s1301_s5 + $0x10] sm:$0xf] }
  0x42   : > { %216 = vst.msk [vmem:[#allocation2 + $0x18] sm:$0xf] %vm209_vm0, %v1157_v2  ;;  %217 = vst.msk [vmem:[#allocation2 + $0x1c] sm:$0xf] %vm209_vm0, %v1157_v2  ;;  %v247_v6 = vld [vmem:[%s1301_s5 + $0x14] sm:$0xf] }
  0x43   : > { %218 = vst.msk [vmem:[#allocation2 + $0x20] sm:$0xf] %vm209_vm0, %v1157_v2  ;;  %219 = vst.msk [vmem:[#allocation2 + $0x24] sm:$0xf] %vm209_vm0, %v1157_v2  ;;  %v248_v7 = vld [vmem:[%s1301_s5 + $0x18] sm:$0xf] }
  0x44   : > { %220 = vst.msk [vmem:[#allocation2 + $0x28] sm:$0xf] %vm209_vm0, %v1157_v2  ;;  %221 = vst.msk [vmem:[#allocation2 + $0x2c] sm:$0xf] %vm209_vm0, %v1157_v2  ;;  %v249_v8 = vld [vmem:[%s1301_s5 + $0x1c] sm:$0xf] }
  0x45   : > { %222 = vst.msk [vmem:[#allocation2 + $0x30] sm:$0xf] %vm209_vm0, %v1157_v2  ;;  %223 = vst.msk [vmem:[#allocation2 + $0x34] sm:$0xf] %vm209_vm0, %v1157_v2  ;;  %v250_v9 = vld [vmem:[%s1301_s5 + $0x20] sm:$0xf] }
  0x46   : > { %224 = vst.msk [vmem:[#allocation2 + $0x38] sm:$0xf] %vm209_vm0, %v1157_v2  ;;  %225 = vst.msk [vmem:[#allocation2 + $0x3c] sm:$0xf] %vm209_vm0, %v1157_v2  ;;  %v251_v10 = vld [vmem:[%s1301_s5 + $0x24] sm:$0xf] }
  0x47   : > { %226 = vst.msk [vmem:[#allocation2 + $0x40] sm:$0xf] %vm209_vm0, %v1157_v2  ;;  %227 = vst.msk [vmem:[#allocation2 + $0x44] sm:$0xf] %vm209_vm0, %v1157_v2  ;;  %v252_v11 = vld [vmem:[%s1301_s5 + $0x28] sm:$0xf] }
  0x48   : > { %228 = vst.msk [vmem:[#allocation2 + $0x48] sm:$0xf] %vm209_vm0, %v1157_v2  ;;  %229 = vst.msk [vmem:[#allocation2 + $0x4c] sm:$0xf] %vm209_vm0, %v1157_v2  ;;  %v253_v12 = vld [vmem:[%s1301_s5 + $0x2c] sm:$0xf] }
  0x49   : > { %230 = vst.msk [vmem:[#allocation2 + $0x50] sm:$0xf] %vm209_vm0, %v1157_v2  ;;  %231 = vst.msk [vmem:[#allocation2 + $0x54] sm:$0xf] %vm209_vm0, %v1157_v2  ;;  %v254_v13 = vld [vmem:[%s1301_s5 + $0x30] sm:$0xf] }
  0x4a   : > { %232 = vst.msk [vmem:[#allocation2 + $0x58] sm:$0xf] %vm209_vm0, %v1157_v2  ;;  %233 = vst.msk [vmem:[#allocation2 + $0x5c] sm:$0xf] %vm209_vm0, %v1157_v2  ;;  %v255_v14 = vld [vmem:[%s1301_s5 + $0x34] sm:$0xf] }
  0x4b   : > { %234 = vst.msk [vmem:[#allocation2 + $0x60] sm:$0xf] %vm209_vm0, %v1157_v2  ;;  %235 = vst.msk [vmem:[#allocation2 + $0x64] sm:$0xf] %vm209_vm0, %v1157_v2  ;;  %v256_v15 = vld [vmem:[%s1301_s5 + $0x38] sm:$0xf] }
  0x4c   : > { %236 = vst.msk [vmem:[#allocation2 + $0x68] sm:$0xf] %vm209_vm0, %v1157_v2  ;;  %237 = vst.msk [vmem:[#allocation2 + $0x6c] sm:$0xf] %vm209_vm0, %v1157_v2  ;;  %v257_v16 = vld [vmem:[%s1301_s5 + $0x3c] sm:$0xf] }
  0x4d   : > { %238 = vst.msk [vmem:[#allocation2 + $0x70] sm:$0xf] %vm209_vm0, %v1157_v2  ;;  %239 = vst.msk [vmem:[#allocation2 + $0x74] sm:$0xf] %vm209_vm0, %v1157_v2  ;;  %v258_v17 = vld [vmem:[%s1301_s5 + $0x40] sm:$0xf] }
  0x4e   : > { %240 = vst.msk [vmem:[#allocation2 + $0x78] sm:$0xf] %vm209_vm0, %v1157_v2  ;;  %241 = vst.msk [vmem:[#allocation2 + $0x7c] sm:$0xf] %vm209_vm0, %v1157_v2  ;;  %v259_v18 = vld [vmem:[%s1301_s5 + $0x44] sm:$0xf] }
  0x4f   : > { %274 = vst.msk [vmem:[#allocation2] sm:$0xf] %vm209_vm0, %v242_v0  ;;  %275 = vst.msk [vmem:[#allocation2 + $0x4] sm:$0xf] %vm209_vm0, %v243_v1  ;;  %v260_v19 = vld [vmem:[%s1301_s5 + $0x48] sm:$0xf] }
  0x50   : > { %276 = vst.msk [vmem:[#allocation2 + $0x8] sm:$0xf] %vm209_vm0, %v244_v3  ;;  %277 = vst.msk [vmem:[#allocation2 + $0xc] sm:$0xf] %vm209_vm0, %v245_v4  ;;  %v261_v20 = vld [vmem:[%s1301_s5 + $0x4c] sm:$0xf] }
  0x51   : > { %278 = vst.msk [vmem:[#allocation2 + $0x10] sm:$0xf] %vm209_vm0, %v246_v5  ;;  %279 = vst.msk [vmem:[#allocation2 + $0x14] sm:$0xf] %vm209_vm0, %v247_v6  ;;  %v262_v21 = vld [vmem:[%s1301_s5 + $0x50] sm:$0xf] }
  0x52   : > { %280 = vst.msk [vmem:[#allocation2 + $0x18] sm:$0xf] %vm209_vm0, %v248_v7  ;;  %281 = vst.msk [vmem:[#allocation2 + $0x1c] sm:$0xf] %vm209_vm0, %v249_v8  ;;  %v263_v22 = vld [vmem:[%s1301_s5 + $0x54] sm:$0xf] }
  0x53   : > { %282 = vst.msk [vmem:[#allocation2 + $0x20] sm:$0xf] %vm209_vm0, %v250_v9  ;;  %283 = vst.msk [vmem:[#allocation2 + $0x24] sm:$0xf] %vm209_vm0, %v251_v10  ;;  %v264_v23 = vld [vmem:[%s1301_s5 + $0x58] sm:$0xf] }
  0x54   : > { %284 = vst.msk [vmem:[#allocation2 + $0x28] sm:$0xf] %vm209_vm0, %v252_v11  ;;  %285 = vst.msk [vmem:[#allocation2 + $0x2c] sm:$0xf] %vm209_vm0, %v253_v12  ;;  %v265_v24 = vld [vmem:[%s1301_s5 + $0x5c] sm:$0xf] }
  0x55   : > { %286 = vst.msk [vmem:[#allocation2 + $0x30] sm:$0xf] %vm209_vm0, %v254_v13  ;;  %287 = vst.msk [vmem:[#allocation2 + $0x34] sm:$0xf] %vm209_vm0, %v255_v14  ;;  %v266_v25 = vld [vmem:[%s1301_s5 + $0x60] sm:$0xf] }
  0x56   : > { %288 = vst.msk [vmem:[#allocation2 + $0x38] sm:$0xf] %vm209_vm0, %v256_v15  ;;  %289 = vst.msk [vmem:[#allocation2 + $0x3c] sm:$0xf] %vm209_vm0, %v257_v16  ;;  %v267_v26 = vld [vmem:[%s1301_s5 + $0x64] sm:$0xf] }
  0x57   : > { %290 = vst.msk [vmem:[#allocation2 + $0x40] sm:$0xf] %vm209_vm0, %v258_v17  ;;  %291 = vst.msk [vmem:[#allocation2 + $0x44] sm:$0xf] %vm209_vm0, %v259_v18  ;;  %v268_v27 = vld [vmem:[%s1301_s5 + $0x68] sm:$0xf] }
  0x58   : > { %292 = vst.msk [vmem:[#allocation2 + $0x48] sm:$0xf] %vm209_vm0, %v260_v19  ;;  %293 = vst.msk [vmem:[#allocation2 + $0x4c] sm:$0xf] %vm209_vm0, %v261_v20  ;;  %v269_v28 = vld [vmem:[%s1301_s5 + $0x6c] sm:$0xf] }
  0x59   : > { %294 = vst.msk [vmem:[#allocation2 + $0x50] sm:$0xf] %vm209_vm0, %v262_v21  ;;  %295 = vst.msk [vmem:[#allocation2 + $0x54] sm:$0xf] %vm209_vm0, %v263_v22  ;;  %v270_v29 = vld [vmem:[%s1301_s5 + $0x70] sm:$0xf] }
  0x5a   : > { %296 = vst.msk [vmem:[#allocation2 + $0x58] sm:$0xf] %vm209_vm0, %v264_v23  ;;  %297 = vst.msk [vmem:[#allocation2 + $0x5c] sm:$0xf] %vm209_vm0, %v265_v24  ;;  %v271_v30 = vld [vmem:[%s1301_s5 + $0x74] sm:$0xf] }
  0x5b   : > { %298 = vst.msk [vmem:[#allocation2 + $0x60] sm:$0xf] %vm209_vm0, %v266_v25  ;;  %299 = vst.msk [vmem:[#allocation2 + $0x64] sm:$0xf] %vm209_vm0, %v267_v26  ;;  %v272_v31 = vld [vmem:[%s1301_s5 + $0x78] sm:$0xf] }
  0x5c   : > { %300 = vst.msk [vmem:[#allocation2 + $0x68] sm:$0xf] %vm209_vm0, %v268_v27  ;;  %301 = vst.msk [vmem:[#allocation2 + $0x6c] sm:$0xf] %vm209_vm0, %v269_v28  ;;  %v273_v32 = vld [vmem:[%s1301_s5 + $0x7c] sm:$0xf] }
  0x5d   : > { %302 = vst.msk [vmem:[#allocation2 + $0x70] sm:$0xf] %vm209_vm0, %v270_v29  ;;  %303 = vst.msk [vmem:[#allocation2 + $0x74] sm:$0xf] %vm209_vm0, %v271_v30 }
  0x5e   : > { %304 = vst.msk [vmem:[#allocation2 + $0x78] sm:$0xf] %vm209_vm0, %v272_v31  ;;  %305 = vst.msk [vmem:[#allocation2 + $0x7c] sm:$0xf] %vm209_vm0, %v273_v32 }
  0x5f PF: > { %v990_v33 = vld [vmem:[%s1572_s1 + $0x28] ss:$0 sps:$4 sm:$0x11]   ;;  %vm442_vm1 = vcmask 1040384   ;;  %v1158_v34 = vmov 0   ;;  %v991_v37 = vld [vmem:[%s1572_s1 + $0x20] sm:$0xff]  }
  0x60   : > { %v444_v35 = vsel %vm442_vm1, 65535, %v1158_v34  ;;  %s810_s15 = sshll.u32 %s1136_s18, 6  ;;  %v992_v38 = vld [vmem:[%s1572_s1 + $0x18] sm:$0xff]   ;;  %vm417_vm2 = vcmask 662528   ;;  %v993_v41 = vld [vmem:[%s1572_s1 + $0x10] sm:$0xff]   ;;  %v994_v42 = vld [vmem:[%s1572_s1 + $0x8] sm:$0xff]  }
  0x61   : > { %v446_v36 = vand.u32 %v990_v33, %v444_v35  ;;  %s1419_s21 = scalar_lea.vmem [#allocation2], %s810_s15  ;;  %v995_v43 = vld [vmem:[%s1572_s1] sm:$0xff]   ;;  %vm625_vm3 = vcmask 519168   ;;  %s827_s15 = sshll.u32 %s1136_s18, 4 }
  0x62   : > { %v1449_v50 = vld [vmem:[%s1573_s2] ss:$0 sm:$0xff]  ;;  %s804_s26 = sshll.u32 %s1140_s19, 5  ;;  %s659_s28 = sshll.u32 %s1310_s6, 4  ;;  %s1499_s28 = int_to_ptr.vmem [resolvable:$true] %s659_s28 }
  0x63   : > { %842 = vmatprep.subr.bf16.mxu0 %v446_v36  ;;  %870 = vmatprep.subr.bf16.mxu1 %v446_v36  ;;  %s656_s18 = sadd.s32 %s827_s15, %s804_s26  ;;  %s1511_s5 = scalar_lea.sflag [#allocation5], %s200_s27 }
  0x64   : > { %843 = vmatpush3.bf16.msra.mxu0 %v446_v36  ;;  %876 = vmatpush3.bf16.msra.mxu1 %v446_v36  ;;  %s805_s19 = sshll.u32 %s656_s18, 6  ;;  %s1032_s25 = scalar_lea.vmem %s1499_s28, 1024 }
  0x65   : > { %v996_v39 = vld [vmem:[%s1419_s21] sm:$0xff]   ;;  %844 = vmatprep.subr.bf16.mxu0 %v991_v37  ;;  %871 = vmatprep.subr.bf16.mxu1 %v991_v37  ;;  %v998_v44 = vld [vmem:[%s1419_s21 + $0x8] sm:$0xff]   ;;  %v1000_v46 = vld [vmem:[%s1419_s21 + $0x10] sm:$0xff]   ;;  %s1497_s23 = scalar_lea.hbm %s1574_s3, %s805_s19  ;;  %p1033_p7 = scmp.ne.s32.totalorder %s1499_s28, %s1032_s25 }
  0x66   : > { %v997_v40 = vld [vmem:[%s1419_s21 + $0x20] sm:$0xff]   ;;  %854 = vmatprep.mubr.msk.bf16.mxu0 %vm417_vm2, %v996_v39  ;;  %v999_v45 = vld [vmem:[%s1419_s21 + $0x28] sm:$0xff]   ;;  %v1001_v47 = vld [vmem:[%s1419_s21 + $0x30] sm:$0xff]   ;;  %s1159_s4 = smov [#allocation6]  }
  0x67   : > { %862 = vmatprep.mubr.msk.bf16.mxu1 %vm417_vm2, %v997_v40  ;;  %v1002_v48 = vld [vmem:[%s1419_s21 + $0x18] sm:$0xff]   ;;  %p1034_p5 = pnand %p1033_p7, %p1264_p12  ;;  %s1036_s24 = sshll.u32 %s1159_s4, 4  ;;  %s1037_s24 = int_to_ptr.vmem [resolvable:$false] %s1036_s24 }
  0x68   : > { %845 = vmatpush3.bf16.msra.mxu0 %v991_v37  ;;  %877 = vmatpush3.bf16.msra.mxu1 %v991_v37  ;;  %v1003_v49 = vld [vmem:[%s1419_s21 + $0x38] sm:$0xff]   ;;  %s1038_s30 = scalar_lea.vmem %s1037_s24, 2048  ;;  %p1039_p9 = scmp.lt.s32.totalorder %s1499_s28, %s1037_s24 }
  0x69   : > { %846 = vmatprep.subr.bf16.mxu0 %v992_v38  ;;  %872 = vmatprep.subr.bf16.mxu1 %v992_v38  ;;  %p1035_p8 = pneg %p1034_p5  ;;  %p1040_p10 = scmp.lt.s32.totalorder %s1038_s30, %s1032_s25 }
  0x6b   : > { %p1041_p11 = por %p1040_p10, %p1039_p9 }
  0x6c   : > { %847 = vmatpush3.bf16.msra.mxu0 %v992_v38  ;;  %878 = vmatpush3.bf16.msra.mxu1 %v992_v38 }
  0x6d   : > { %848 = vmatprep.subr.bf16.mxu0 %v993_v41  ;;  %873 = vmatprep.subr.bf16.mxu1 %v993_v41  ;;  %p1042_p13 = pnand %p1041_p11, %p1035_p8 }
  0x70   : > { %849 = vmatpush3.bf16.msra.mxu0 %v993_v41  ;;  %879 = vmatpush3.bf16.msra.mxu1 %v993_v41 }
  0x71   : > { %850 = vmatprep.subr.bf16.mxu0 %v994_v42  ;;  %874 = vmatprep.subr.bf16.mxu1 %v994_v42 }
  0x74   : > { %851 = vmatpush3.bf16.msra.mxu0 %v994_v42  ;;  %880 = vmatpush3.bf16.msra.mxu1 %v994_v42 }
  0x75   : > { %852 = vmatprep.subr.bf16.mxu0 %v995_v43  ;;  %875 = vmatprep.subr.bf16.mxu1 %v995_v43 }
  0x78   : > { %853 = vmatpush3.bf16.msra.mxu0 %v995_v43  ;;  %881 = vmatpush3.bf16.msra.mxu1 %v995_v43 }
  0x7b   : > { %855 = vmatmul.mubr.msk.bf16.vlgmr.msra.gmra.mxu0 %vm417_vm2, %v998_v44  ;;  %863 = vmatmul.mubr.msk.bf16.vlgmr.msra.gmra.mxu1 %vm417_vm2, %v999_v45 }
  0x7c   : > { %858 = vmatprep.mubr.msk.bf16.mxu0 %vm417_vm2, %v1000_v46  ;;  %866 = vmatprep.mubr.msk.bf16.mxu1 %vm417_vm2, %v1001_v47 }
  0x83   : > { %859 = vmatmul.mubr.msk.bf16.gmra.mxu0 %vm417_vm2, %v1002_v48  ;;  %867 = vmatmul.mubr.msk.bf16.gmra.mxu1 %vm417_vm2, %v1003_v49 }
 0x13b   : > { %v856_v51 = vpop.f32.mrf.mxu0  ;;  %v864_v52 = vpop.f32.mrf.mxu1 }
 0x13c   : > { %v491_v53 = vadd.f32 %v856_v51, %v1449_v50  ;;  %v523_v54 = vadd.f32 %v864_v52, %v1449_v50 }
 0x13d   : > { %v482_v55 = vpop.f32.mrf.mxu0  ;;  %v514_v56 = vpop.f32.mrf.mxu1 }
 0x13e   : > { %v547_v57 = vmax.f32 %v491_v53, 0.0  ;;  %v555_v58 = vmax.f32 %v523_v54, 0.0  ;;  %v483_v59 = vadd.f32 %v1449_v50, %v482_v55  ;;  %v515_v60 = vadd.f32 %v1449_v50, %v514_v56 }
 0x13f   : > { %v857_v61 = vpop.f32.mrf.mxu0  ;;  %v865_v62 = vpop.f32.mrf.mxu1 }
 0x140   : > { %v813_v63 = vpack.c.bf16 %v547_v57, %v547_v57  ;;  %v821_v0 = vpack.c.bf16 %v555_v58, %v555_v58  ;;  %v545_v1 = vmax.f32 %v483_v59, 0.0  ;;  %v553_v2 = vmax.f32 %v515_v60, 0.0 }
 0x141   : > { %v494_v3 = vadd.f32 %v857_v61, %v1449_v50  ;;  %v526_v4 = vadd.f32 %v865_v62, %v1449_v50  ;;  %v485_v5 = vpop.f32.mrf.mxu0  ;;  %v517_v6 = vpop.f32.mrf.mxu1 }
 0x142   : > { %628 = vst.msk [vmem:[%s1310_s6 + $0x8] sm:$0xf] %vm625_vm3, %v813_v63  ;;  %636 = vst.msk [vmem:[%s1310_s6 + $0x28] sm:$0xf] %vm625_vm3, %v821_v0  ;;  %v811_v7 = vpack.c.bf16 %v545_v1, %v545_v1  ;;  %v819_v8 = vpack.c.bf16 %v553_v2, %v553_v2  ;;  %v486_v9 = vadd.f32 %v1449_v50, %v485_v5 }
 0x143   : > { %v518_v10 = vadd.f32 %v1449_v50, %v517_v6  ;;  %v548_v11 = vmax.f32 %v494_v3, 0.0  ;;  %v556_v12 = vmax.f32 %v526_v4, 0.0  ;;  %v860_v13 = vpop.f32.mrf.mxu0  ;;  %v868_v14 = vpop.f32.mrf.mxu1 }
 0x144   : > { %626 = vst.msk [vmem:[%s1310_s6] sm:$0xf] %vm625_vm3, %v811_v7  ;;  %634 = vst.msk [vmem:[%s1310_s6 + $0x20] sm:$0xf] %vm625_vm3, %v819_v8  ;;  %v546_v15 = vmax.f32 %v486_v9, 0.0  ;;  %v507_v17 = vadd.f32 %v860_v13, %v1449_v50  ;;  %v539_v18 = vadd.f32 %v868_v14, %v1449_v50 }
 0x145   : > { %v554_v16 = vmax.f32 %v518_v10, 0.0  ;;  %v814_v19 = vpack.c.bf16 %v548_v11, %v548_v11  ;;  %v822_v20 = vpack.c.bf16 %v556_v12, %v556_v12  ;;  %v498_v21 = vpop.f32.mrf.mxu0  ;;  %v530_v22 = vpop.f32.mrf.mxu1 }
 0x146   : > { %v812_v23 = vpack.c.bf16 %v546_v15, %v546_v15  ;;  %v551_v25 = vmax.f32 %v507_v17, 0.0  ;;  %v559_v26 = vmax.f32 %v539_v18, 0.0  ;;  %v499_v27 = vadd.f32 %v1449_v50, %v498_v21 }
 0x147   : > { %v820_v24 = vpack.c.bf16 %v554_v16, %v554_v16  ;;  %629 = vst.msk [vmem:[%s1310_s6 + $0xc] sm:$0xf] %vm625_vm3, %v814_v19  ;;  %637 = vst.msk [vmem:[%s1310_s6 + $0x2c] sm:$0xf] %vm625_vm3, %v822_v20  ;;  %v531_v28 = vadd.f32 %v1449_v50, %v530_v22  ;;  %v861_v29 = vpop.f32.mrf.mxu0  ;;  %v869_v30 = vpop.f32.mrf.mxu1 }
 0x148   : > { %627 = vst.msk [vmem:[%s1310_s6 + $0x4] sm:$0xf] %vm625_vm3, %v812_v23  ;;  %v817_v31 = vpack.c.bf16 %v551_v25, %v551_v25  ;;  %v825_v32 = vpack.c.bf16 %v559_v26, %v559_v26  ;;  %v510_v33 = vadd.f32 %v861_v29, %v1449_v50  ;;  %v542_v34 = vadd.f32 %v869_v30, %v1449_v50 }
 0x149   : > { %635 = vst.msk [vmem:[%s1310_s6 + $0x24] sm:$0xf] %vm625_vm3, %v820_v24  ;;  %v549_v35 = vmax.f32 %v499_v27, 0.0  ;;  %v557_v36 = vmax.f32 %v531_v28, 0.0  ;;  %v501_v37 = vpop.f32.mrf.mxu0  ;;  %v533_v38 = vpop.f32.mrf.mxu1 }
 0x14a   : > { %632 = vst.msk [vmem:[%s1310_s6 + $0x18] sm:$0xf] %vm625_vm3, %v817_v31  ;;  %640 = vst.msk [vmem:[%s1310_s6 + $0x38] sm:$0xf] %vm625_vm3, %v825_v32  ;;  %v552_v39 = vmax.f32 %v510_v33, 0.0  ;;  %v560_v40 = vmax.f32 %v542_v34, 0.0  ;;  %v502_v41 = vadd.f32 %v1449_v50, %v501_v37  ;;  %v534_v42 = vadd.f32 %v1449_v50, %v533_v38 }
 0x14b   : > { %v815_v43 = vpack.c.bf16 %v549_v35, %v549_v35  ;;  %v823_v44 = vpack.c.bf16 %v557_v36, %v557_v36 }
 0x14c   : > { %v818_v45 = vpack.c.bf16 %v552_v39, %v552_v39  ;;  %v826_v46 = vpack.c.bf16 %v560_v40, %v560_v40  ;;  %v550_v47 = vmax.f32 %v502_v41, 0.0  ;;  %v558_v48 = vmax.f32 %v534_v42, 0.0 }
 0x14d   : > { %630 = vst.msk [vmem:[%s1310_s6 + $0x10] sm:$0xf] %vm625_vm3, %v815_v43  ;;  %638 = vst.msk [vmem:[%s1310_s6 + $0x30] sm:$0xf] %vm625_vm3, %v823_v44 }
 0x14e   : > { %633 = vst.msk [vmem:[%s1310_s6 + $0x1c] sm:$0xf] %vm625_vm3, %v818_v45  ;;  %641 = vst.msk [vmem:[%s1310_s6 + $0x3c] sm:$0xf] %vm625_vm3, %v826_v46  ;;  %v816_v49 = vpack.c.bf16 %v550_v47, %v550_v47  ;;  %v824_v50 = vpack.c.bf16 %v558_v48, %v558_v48 }
 0x150   : > { %631 = vst.msk [vmem:[%s1310_s6 + $0x14] sm:$0xf] %vm625_vm3, %v816_v49  ;;  %639 = vst.msk [vmem:[%s1310_s6 + $0x34] sm:$0xf] %vm625_vm3, %v824_v50 }
 0x151   : > { %1045 = shalt.err (!%p1042_p13)
}
 0x152   : > { %s1046_s27 = scalar_lea.hbm %s1497_s23, 1024  ;;  %s1050_s15 = scalar_lea.hbm %s1574_s3, 4096 }
 0x153   : > { %p1047_p0 = scmp.ne.s32.totalorder %s1497_s23, %s1046_s27  ;;  %p1051_p6 = scmp.lt.s32.totalorder %s1497_s23, %s1574_s3 }
 0x154   : > { %p1052_p4 = scmp.lt.s32.totalorder %s1050_s15, %s1046_s27 }
 0x155   : > { %p1048_p3 = pnand %p1047_p0, %p1264_p12 }
 0x156   : > { %p1053_p7 = por %p1052_p4, %p1051_p6 }
 0x157   : > { %p1049_p1 = pneg %p1048_p3 }
 0x159   : > { %p1054_p5 = pnand %p1053_p7, %p1049_p1 }
 0x15b   : > { %1057 = shalt.err (!%p1054_p5)
}
 0x15c   : > { %s1160_s19 = smov 64   ;;  %s1161_s21 = smov 4  }
 0x15d   : > { %884 = dma.vmem_to_hbm [thread:$0]  (%p1264_p12), %s1499_s28, 1024, %s1497_s23, %s1511_s5, %s1160_s19, %s1160_s19, %s1161_s21  }
 0x15e PF: > { %p895_p8 = scmp.ge.s32.totalorder %s1152_s22, 2  ;;  %s674_s11 = sand.u32 1, %s1112_s12  }
 0x15f   : > { %s675_s25 = scalar_lea.sflag [#allocation5], %s674_s11 }
 0x160   : > { %p891_p9 = pnand %p895_p8, %p1277_p2 }
 0x162   : > { %p892_p10 = pneg %p891_p9 }
 0x164   : > { %1107 = dma.done.wait (%p892_p10), %s675_s25, 1024  }
 0x165   : > { %1109 = vsyncadd (%p892_p10), %s675_s25, 4294966272  ;;  %s19_s22 = sadd.s32 1, %s1152_s22   ;;  %s1586_s19 = sld [smem:[#allocation9_spill]] }
 0x166   : > { %p16_p11 = scmp.ge.s32.totalorder %s19_s22, 6   ;;  %s1587_s7 = sld [smem:[#allocation10_spill]] }
 0x167   : > { %s1588_s21 = sld [smem:[#allocation11_spill]]  ;;  %s1589_s12 = smov %s1116_s13 }
 0x168   : > { %s1590_s13 = smov %s1120_s14  ;;  %s1591_s14 = smov %s1272_s9 }
 0x169   : > { %s1592_s15 = smov %s1128_s16  ;;  %s1593_s16 = smov %s1132_s17 }
 0x16a   : > { %s1594_s17 = smov %s1269_s8  ;;  %s1595_s18 = smov %s1144_s20 }
 0x16b   :  { %18 = sbr.rel (!%p16_p11) target bundleno = 9 (0x9), region = 82 }
 0x16c   : > { %s1596_s20 = smov %s1587_s7 }
 0x170   :  { %680 = vsyncpa [#allocation4], 1 }
 0x171   :  { %682 = vsyncpa [#allocation4 + $0x1], 1 }
 0x172   :  { %683 = vsyncpa [#allocation5], 1 }
 0x173   :  { %685 = vsyncpa [#allocation5 + $0x1], 1 }

</bundles_post_ra>
